<compile_context>
chip_gen: v5e
topology: v5e:2x2
jax: 0.10.0
libtpu: 0.0.40
codegen_flags: <defaults>
</compile_context>

<pallas_src>
import jax
import jax.numpy as jnp
from jax.experimental import pallas as pl
from jax.experimental.pallas import tpu as pltpu

HIDDEN = (128, 128)


def critic_kernel(x_ref, w1_ref, b1_ref, w2_ref, b2_ref, w3_ref, b3_ref, o_ref):
    # Layer 1: Linear (MXU, bf16 inputs / f32 accumulation) + bias + ReLU (f32 VPU).
    h = jnp.dot(x_ref[...], w1_ref[...], preferred_element_type=jnp.float32)
    h = jnp.maximum(h + b1_ref[...], 0.0)
    # Layer 2: Linear + ReLU.  Cast back to the weight dtype for the MXU.
    h = jnp.dot(h.astype(w2_ref.dtype), w2_ref[...],
                preferred_element_type=jnp.float32)
    h = jnp.maximum(h + b2_ref[...], 0.0)
    # Value head on the VPU + XLU: per-row dot with a (1, h2) weight row
    # (avoids a near-useless N=1 MXU matmul + result-FIFO drain).
    v = jnp.sum(h * w3_ref[...], axis=-1, keepdims=True) + b3_ref[...]   # (tb, 1)
    # Lane-dense store: (tb, 1) column -> (1, 1, tb) row of the output slab.
    o_ref[...] = v.reshape(o_ref.shape)


def _pick_block_batch(batch, feat, itemsize):
    """Default batch tile: <= 512 rows, multiple of 8, and small enough that
    the double-buffered x tile stays well under the scoped VMEM limit
    (16 MiB v5e, 32 MiB v6e/v7x)."""
    if batch <= 512:
        return batch                              # full block == full dims (always legal)
    x_budget = 8 * 1024 * 1024                    # bytes for the double-buffered x tile
    tb = min(512, max(8, x_budget // (2 * feat * itemsize)))
    return max(8, (tb // 8) * 8)


def critic_forward(x, params, *, block_batch=None, use_bf16=True):
    """x: (B, n_features) f32 -> (B, 1) f32 value estimates."""
    w1, b1, w2, b2, w3, b3 = params
    B, F = x.shape
    h1 = w1.shape[1]
    h2 = w2.shape[1]

    # MXU operands in bf16 (halves HBM traffic for x, unlocks the bf16 MXU
    # path on v6e/v7x); accumulation and all elementwise work stay f32.
    mxu_dtype = jnp.bfloat16 if use_bf16 else jnp.float32
    x_m = x.astype(mxu_dtype)
    w1_m = w1.astype(mxu_dtype)
    w2_m = w2.astype(mxu_dtype)
    b1_r = b1.reshape(1, h1).astype(jnp.float32)
    b2_r = b2.reshape(1, h2).astype(jnp.float32)
    w3_r = w3.reshape(1, h2).astype(jnp.float32)    # value-head weight as a row
    b3_r = b3.reshape(1, 1).astype(jnp.float32)

    if block_batch is None:
        tb = _pick_block_batch(B, F, x_m.dtype.itemsize)
    else:
        tb = min(block_batch, B)
    if tb < B:
        tb = max(8, (tb // 8) * 8)                  # sublane divisibility when tiling
    num_tiles = pl.cdiv(B, tb)

    full = lambda shape: pl.BlockSpec(shape, lambda i: tuple(0 for _ in shape))

    flops = 2 * B * (F * h1 + h1 * h2 + h2)
    bytes_accessed = (x_m.size * x_m.dtype.itemsize
                      + w1_m.size * w1_m.dtype.itemsize
                      + w2_m.size * w2_m.dtype.itemsize
                      + (b1_r.size + b2_r.size + w3_r.size + b3_r.size) * 4
                      + num_tiles * tb * 4)

    out = pl.pallas_call(
        critic_kernel,
        # Lane-dense output slab: one (1, tb) row of values per batch tile.
        out_shape=jax.ShapeDtypeStruct((num_tiles, 1, tb), jnp.float32),
        grid_spec=pltpu.PrefetchScalarGridSpec(
            num_scalar_prefetch=0,
            grid=(num_tiles,),
            in_specs=[
                pl.BlockSpec((tb, F), lambda i: (i, 0)),   # x: streamed over batch
                full((F, h1)),                             # W1 (resident)
                full((1, h1)),                             # b1
                full((h1, h2)),                            # W2
                full((1, h2)),                             # b2
                full((1, h2)),                             # W3 as a row
                full((1, 1)),                              # b3
            ],
            out_specs=pl.BlockSpec((1, 1, tb), lambda i: (i, 0, 0)),
        ),
        compiler_params=pltpu.CompilerParams(
            dimension_semantics=("parallel",)),
        cost_estimate=pl.CostEstimate(
            flops=flops, transcendentals=0, bytes_accessed=bytes_accessed),
    )(x_m, w1_m, b1_r, w2_m, b2_r, w3_r, b3_r)

    # (num_tiles, 1, tb) slab -> (B, 1); rows past B (ragged last tile) dropped.
    return out.reshape(num_tiles * tb, 1)[:B]


def init_params(key, n_features, hidden=HIDDEN):
    """nn.Linear-style init + the value_head weight*0.1 / bias*0.0 tweak."""
    keys = jax.random.split(key, 2 * (len(hidden) + 1))
    params = []
    last = n_features
    ki = 0
    for nh in hidden:
        bound = 1.0 / jnp.sqrt(last)
        w = jax.random.uniform(keys[ki], (last, nh), jnp.float32, -bound, bound)
        b = jax.random.uniform(keys[ki + 1], (1, nh), jnp.float32, -bound, bound)
        params += [w, b]
        last = nh
        ki += 2
    bound = 1.0 / jnp.sqrt(last)
    w = jax.random.uniform(keys[ki], (last, 1), jnp.float32, -bound, bound) * 0.1
    b = jnp.zeros((1, 1), jnp.float32)   # value_head.bias.data.mul_(0.0)
    params += [w, b]
    return tuple(params)


def critic_forward_ref(x, params, *, use_bf16=True):
    """Pure-JAX reference with the same bf16 rounding of the MXU operands."""
    w1, b1, w2, b2, w3, b3 = params
    if use_bf16:
        rnd = lambda a: a.astype(jnp.bfloat16).astype(jnp.float32)
        x, w1, w2 = rnd(x), rnd(w1), rnd(w2)
        h = jnp.maximum(x @ w1 + b1, 0.0)
        h = jnp.maximum(rnd(h) @ w2 + b2, 0.0)
    else:
        h = jnp.maximum(x @ w1 + b1, 0.0)
        h = jnp.maximum(h @ w2 + b2, 0.0)
    return h @ w3 + b3.reshape(1, 1)


if __name__ == "__main__":
    key = jax.random.PRNGKey(0)
    k_x, k_p, k_x2 = jax.random.split(key, 3)

    batch, n_features = 8, 32
    x = jax.random.normal(k_x, (batch, n_features), jnp.float32)
    params = init_params(k_p, n_features)

    value = jax.block_until_ready(critic_forward(x, params))
    ref = critic_forward_ref(x, params)
    assert value.shape == (batch, 1)
    assert jnp.allclose(value, ref, atol=1e-4, rtol=1e-4)

    # Exercise the multi-tile (pipelined / megacore) path with a ragged last tile.
    big_b = 1040
    x_big = jax.random.normal(k_x2, (big_b, n_features), jnp.float32)
    value_big = jax.block_until_ready(critic_forward(x_big, params))
    ref_big = critic_forward_ref(x_big, params)
    assert value_big.shape == (big_b, 1)
    assert jnp.allclose(value_big, ref_big, atol=1e-4, rtol=1e-4)

    # TODO(synk): Critic.learn (Adam step, MSE loss, backward) is training-side
    # and intentionally not implemented as a Pallas kernel.
    print("KERNEL_OK")
</pallas_src>

<mosaic_0001>
module attributes {stable_mosaic.version = 11 : i64} {
  func.func @critic_kernel(%arg0: i32, %arg1: memref<8x32xbf16, #tpu.memory_space<vmem>>, %arg2: memref<32x128xbf16, #tpu.memory_space<vmem>>, %arg3: memref<1x128xf32, #tpu.memory_space<vmem>>, %arg4: memref<128x128xbf16, #tpu.memory_space<vmem>>, %arg5: memref<1x128xf32, #tpu.memory_space<vmem>>, %arg6: memref<1x128xf32, #tpu.memory_space<vmem>>, %arg7: memref<1x1xf32, #tpu.memory_space<vmem>>, %arg8: memref<1x1x8xf32, #tpu.memory_space<vmem>>) attributes {dimension_semantics = [#tpu.dimension_semantics<parallel>], iteration_bounds = array<i64: 1>, scalar_prefetch = 0 : i64, scratch_operands = 0 : i64, tpu.core_type = #tpu.core_type<tc>, window_params = [{transform_indices = @transform_0, window_bounds = array<i64: 8, 32>}, {pipeline_mode = #tpu.pipeline_mode<synchronous>, transform_indices = @transform_1, window_bounds = array<i64: 32, 128>}, {pipeline_mode = #tpu.pipeline_mode<synchronous>, transform_indices = @transform_2, window_bounds = array<i64: 1, 128>}, {pipeline_mode = #tpu.pipeline_mode<synchronous>, transform_indices = @transform_3, window_bounds = array<i64: 128, 128>}, {pipeline_mode = #tpu.pipeline_mode<synchronous>, transform_indices = @transform_4, window_bounds = array<i64: 1, 128>}, {pipeline_mode = #tpu.pipeline_mode<synchronous>, transform_indices = @transform_5, window_bounds = array<i64: 1, 128>}, {pipeline_mode = #tpu.pipeline_mode<synchronous>, transform_indices = @transform_6, window_bounds = array<i64: 1, 1>}, {transform_indices = @transform_7, window_bounds = array<i64: 1, 1, 8>}]} {
    %c0 = arith.constant 0 : index
    %c0_0 = arith.constant 0 : index
    %0 = vector.load %arg1[%c0, %c0_0] : memref<8x32xbf16, #tpu.memory_space<vmem>>, vector<8x32xbf16>
    %c0_1 = arith.constant 0 : index
    %c0_2 = arith.constant 0 : index
    %1 = vector.load %arg2[%c0_1, %c0_2] : memref<32x128xbf16, #tpu.memory_space<vmem>>, vector<32x128xbf16>
    %cst = arith.constant dense<0.000000e+00> : vector<8x128xf32>
    %2 = tpu.matmul %0, %1, %cst {dimension_numbers = #tpu.dot_dimension_numbers<[1], [0], [0], [1], [0, 0, 1, 1], [], []>} : vector<8x32xbf16>, vector<32x128xbf16>, vector<8x128xf32> -> vector<8x128xf32>
    %c0_3 = arith.constant 0 : index
    %c0_4 = arith.constant 0 : index
    %3 = vector.load %arg3[%c0_3, %c0_4] : memref<1x128xf32, #tpu.memory_space<vmem>>, vector<1x128xf32>
    %4 = vector.broadcast %3 : vector<1x128xf32> to vector<8x128xf32>
    %5 = arith.addf %2, %4 : vector<8x128xf32>
    %cst_5 = arith.constant 0.000000e+00 : f32
    %6 = vector.broadcast %cst_5 : f32 to vector<8x128xf32>
    %7 = arith.maximumf %5, %6 : vector<8x128xf32>
    %8 = arith.truncf %7 : vector<8x128xf32> to vector<8x128xbf16>
    %c0_6 = arith.constant 0 : index
    %c0_7 = arith.constant 0 : index
    %9 = vector.load %arg4[%c0_6, %c0_7] : memref<128x128xbf16, #tpu.memory_space<vmem>>, vector<128x128xbf16>
    %cst_8 = arith.constant dense<0.000000e+00> : vector<8x128xf32>
    %10 = tpu.matmul %8, %9, %cst_8 {dimension_numbers = #tpu.dot_dimension_numbers<[1], [0], [0], [1], [0, 0, 1, 1], [], []>} : vector<8x128xbf16>, vector<128x128xbf16>, vector<8x128xf32> -> vector<8x128xf32>
    %c0_9 = arith.constant 0 : index
    %c0_10 = arith.constant 0 : index
    %11 = vector.load %arg5[%c0_9, %c0_10] : memref<1x128xf32, #tpu.memory_space<vmem>>, vector<1x128xf32>
    %12 = vector.broadcast %11 : vector<1x128xf32> to vector<8x128xf32>
    %13 = arith.addf %10, %12 : vector<8x128xf32>
    %cst_11 = arith.constant 0.000000e+00 : f32
    %14 = vector.broadcast %cst_11 : f32 to vector<8x128xf32>
    %15 = arith.maximumf %13, %14 : vector<8x128xf32>
    %c0_12 = arith.constant 0 : index
    %c0_13 = arith.constant 0 : index
    %16 = vector.load %arg6[%c0_12, %c0_13] : memref<1x128xf32, #tpu.memory_space<vmem>>, vector<1x128xf32>
    %17 = vector.broadcast %16 : vector<1x128xf32> to vector<8x128xf32>
    %18 = arith.mulf %15, %17 : vector<8x128xf32>
    %cst_14 = arith.constant dense<0.000000e+00> : vector<8xf32>
    %19 = vector.multi_reduction <add>, %18, %cst_14 [1] : vector<8x128xf32> to vector<8xf32>
    %20 = vector.shape_cast %19 : vector<8xf32> to vector<8x1xf32>
    %c0_15 = arith.constant 0 : index
    %c0_16 = arith.constant 0 : index
    %21 = vector.load %arg7[%c0_15, %c0_16] : memref<1x1xf32, #tpu.memory_space<vmem>>, vector<1x1xf32>
    %22 = vector.broadcast %21 : vector<1x1xf32> to vector<8x1xf32>
    %23 = arith.addf %20, %22 : vector<8x1xf32>
    %24 = vector.shape_cast %23 : vector<8x1xf32> to vector<1x1x8xf32>
    %c0_17 = arith.constant 0 : index
    %c0_18 = arith.constant 0 : index
    %c0_19 = arith.constant 0 : index
    %25 = vector.load %arg8[%c0_17, %c0_18, %c0_19] : memref<1x1x8xf32, #tpu.memory_space<vmem>>, vector<1x1x8xf32>
    tpu.vector_store %arg8[%c0_17, %c0_18, %c0_19], %24 {strides = array<i32>} : memref<1x1x8xf32, #tpu.memory_space<vmem>>, vector<1x1x8xf32>,
    return
  }
  func.func @transform_0(%arg0: i32) -> (i32, i32) {
    %c0_i32 = arith.constant 0 : i32
    %c0_i32_0 = arith.constant 0 : i32
    return %arg0, %c0_i32 : i32, i32
  }
  func.func @transform_1(%arg0: i32) -> (i32, i32) {
    %c0_i32 = arith.constant 0 : i32
    %c0_i32_0 = arith.constant 0 : i32
    %c0_i32_1 = arith.constant 0 : i32
    return %c0_i32, %c0_i32_0 : i32, i32
  }
  func.func @transform_2(%arg0: i32) -> (i32, i32) {
    %c0_i32 = arith.constant 0 : i32
    %c0_i32_0 = arith.constant 0 : i32
    %c0_i32_1 = arith.constant 0 : i32
    return %c0_i32, %c0_i32_0 : i32, i32
  }
  func.func @transform_3(%arg0: i32) -> (i32, i32) {
    %c0_i32 = arith.constant 0 : i32
    %c0_i32_0 = arith.constant 0 : i32
    %c0_i32_1 = arith.constant 0 : i32
    return %c0_i32, %c0_i32_0 : i32, i32
  }
  func.func @transform_4(%arg0: i32) -> (i32, i32) {
    %c0_i32 = arith.constant 0 : i32
    %c0_i32_0 = arith.constant 0 : i32
    %c0_i32_1 = arith.constant 0 : i32
    return %c0_i32, %c0_i32_0 : i32, i32
  }
  func.func @transform_5(%arg0: i32) -> (i32, i32) {
    %c0_i32 = arith.constant 0 : i32
    %c0_i32_0 = arith.constant 0 : i32
    %c0_i32_1 = arith.constant 0 : i32
    return %c0_i32, %c0_i32_0 : i32, i32
  }
  func.func @transform_6(%arg0: i32) -> (i32, i32) {
    %c0_i32 = arith.constant 0 : i32
    %c0_i32_0 = arith.constant 0 : i32
    %c0_i32_1 = arith.constant 0 : i32
    return %c0_i32, %c0_i32_0 : i32, i32
  }
  func.func @transform_7(%arg0: i32) -> (i32, i32, i32) {
    %c0_i32 = arith.constant 0 : i32
    %c0_i32_0 = arith.constant 0 : i32
    %c0_i32_1 = arith.constant 0 : i32
    return %arg0, %c0_i32, %c0_i32_0 : i32, i32, i32
  }
}

</mosaic_0001>

<bundles_post_ra>
// kernel: tpu_custom_call.1
= control target key start
LH: loop header
LB: loop body
LE: loop exit
PB: predicated region body
PF: predicated region fallthrough
CT: control target
= control target key end

     0   :  { %s473_s0 = inlined_call_operand.hbm [shape: bf16[8,32], index: 0, kind: input, shape index: {}]   ;;  %s474_s1 = inlined_call_operand.hbm [shape: bf16[32,128], index: 1, kind: input, shape index: {}]   ;;  %s475_s2 = inlined_call_operand.vmem [shape: f32[1,128], index: 2, kind: input, shape index: {}]   ;;  %s476_s3 = inlined_call_operand.hbm [shape: bf16[128,128], index: 3, kind: input, shape index: {}]   ;;  %s477_s4 = inlined_call_operand.vmem [shape: f32[1,128], index: 4, kind: input, shape index: {}]   ;;  %s478_s5 = inlined_call_operand.vmem [shape: f32[1,128], index: 5, kind: input, shape index: {}]   ;;  %s479_s6 = inlined_call_operand.<no memory space> [shape: f32[1,1], index: 6, kind: input, shape index: {}]   ;;  %s480_s7 = inlined_call_operand.hbm [shape: f32[1,1,8], index: 7, kind: output, shape index: {}]  }
   0x1   :  { %v12_v0 = vstv %s479_s6 }
   0x2   :  { %13 = vst [vmem:[#allocation2] sm:$0x1] %v12_v0 }
   0x3   :  { %14 = vsyncpa [#allocation4], 0 }
   0x4   :  { %15 = vsyncpa [#allocation7], 0  ;;  %s32_s28 = sshll.u32 %s474_s1, 4  ;;  %s33_s28 = int_to_ptr.hbm [resolvable:$true] %s32_s28 }
   0x5   :  { %16 = vsyncpa [#allocation5], 0  ;;  %s402_s29 = smov [#allocation6]   ;;  %s22_s10 = sshll.u32 %s473_s0, 4  ;;  %s23_s10 = int_to_ptr.hbm [resolvable:$true] %s22_s10 }
   0x6   :  { %s34_s30 = sshll.u32 %s402_s29, 4  ;;  %s403_s11 = smov 64   ;;  %s35_s30 = int_to_ptr.vmem [resolvable:$true] %s34_s30 }
   0x7   :  { %s404_s12 = smov 4   ;;  %s405_s6 = smov [#allocation3]  }
   0x8   :  { %40 = dma.hbm_to_vmem [thread:$0]  %s33_s28, 256, %s35_s30, [#allocation7], %s403_s11, %s403_s11, %s404_s12  }
   0x9   :  { %s24_s13 = sshll.u32 %s405_s6, 4  ;;  %s47_s16 = sshll.u32 %s476_s3, 4  ;;  %s25_s13 = int_to_ptr.vmem [resolvable:$true] %s24_s13  ;;  %s48_s16 = int_to_ptr.hbm [resolvable:$true] %s47_s16 }
   0xa   :  { %27 = dma.hbm_to_vmem [thread:$0]  %s23_s10, 64, %s25_s13, [#allocation4]  }
   0xb   :  { %s406_s1 = smov [#allocation8]  }
   0xc   :  { %s49_s17 = sshll.u32 %s406_s1, 4  ;;  %s50_s17 = int_to_ptr.vmem [resolvable:$true] %s49_s17 }
   0xd   :  { %55 = dma.hbm_to_vmem [thread:$0]  %s48_s16, 1024, %s50_s17, [#allocation7], %s403_s11, %s403_s11, %s404_s12  }
   0xe   :  { %396 = dma.done.wait [#allocation4], 64  }
   0xf   :  { %397 = vsyncadd [#allocation4], 4294967232 }
  0x10   :  { %398 = dma.done.wait [#allocation7], 1280  }
  0x11   :  { %399 = vsyncadd [#allocation7], 4294966016  ;;  %v279_v1 = vld [vmem:[#allocation6 + $0x8] sm:$0xff]  ;;  %v278_v3 = vld [vmem:[#allocation6] sm:$0xff]  ;;  %vm96_vm0 = vcmask 261120   ;;  %v407_v25 = vmov 0   ;;  %v213_v29 = vlaneseq }
  0x12   :  { %v287_v2 = vld [vmem:[#allocation8 + $0x38] sm:$0xff]  ;;  %106 = vmatpush.bf16.msra.mxu0 %v279_v1  ;;  %v286_v4 = vld [vmem:[#allocation8 + $0x30] sm:$0xff]  ;;  %v75_v5 = vld [vmem:[#allocation3] sm:$0xf]  ;;  %295 = vset.pattern.permute.xlu0 %v407_v25  ;;  %s226_s24 = sshll.u32 %s480_s7, 4  ;;  %vm217_vm1 = vcmask 57344   ;;  %s227_s24 = int_to_ptr.hbm [resolvable:$true] %s226_s24 }
  0x13   :  { %183 = vmatpush.bf16.msra.mxu1 %v287_v2  ;;  %v285_v6 = vld [vmem:[#allocation8 + $0x28] sm:$0xff]  ;;  %v284_v7 = vld [vmem:[#allocation8 + $0x20] sm:$0xff]  ;;  %v283_v8 = vld [vmem:[#allocation8 + $0x18] sm:$0xff]  ;;  %v214_v30 = vand.u32 127, %v213_v29 }
  0x14   :  { %v282_v9 = vld [vmem:[#allocation8 + $0x10] sm:$0xff]  ;;  %v281_v10 = vld [vmem:[#allocation8 + $0x8] sm:$0xff]  ;;  %v280_v11 = vld [vmem:[#allocation8] sm:$0xff] }
  0x15   :  { %v296_v12 = vld [vmem:[%s475_s2] ss:$0 sm:$0xff]  ;;  %s408_s2 = smov [#allocation9]  }
  0x16   :  { %107 = vmatpush.bf16.msra.mxu0 %v278_v3  ;;  %v297_v18 = vld [vmem:[%s477_s4] ss:$0 sm:$0xff]  ;;  %s224_s4 = sshll.u32 %s408_s2, 4  ;;  %s225_s4 = int_to_ptr.vmem [resolvable:$true] %s224_s4 }
  0x17   :  { %184 = vmatpush.bf16.msra.mxu1 %v286_v4  ;;  %v298_v21 = vld [vmem:[%s478_s5] ss:$0 sm:$0xff] }
  0x18   :  { %v299_v26 = vld [vmem:[#allocation2] ss:$0 sm:$0xff] }
  0x19   :  { %245 = vmatmul.msk.bf16.vlgmr.msra.gmra.mxu0 %vm96_vm0, %v75_v5 }
  0x1b   :  { %185 = vmatpush.bf16.msra.mxu1 %v285_v6 }
  0x1f   :  { %186 = vmatpush.bf16.msra.mxu1 %v284_v7 }
  0x23   :  { %187 = vmatpush.bf16.msra.mxu1 %v283_v8 }
  0x27   :  { %188 = vmatpush.bf16.msra.mxu1 %v282_v9 }
  0x2b   :  { %189 = vmatpush.bf16.msra.mxu1 %v281_v10 }
  0x2f   :  { %190 = vmatpush.bf16.msra.mxu1 %v280_v11 }
  0x96   :  { %v109_v13 = vpop.f32.mrf.mxu0 }
  0x97   :  { %v110_v14 = vadd.f32 %v296_v12, %v109_v13 }
  0x99   :  { %v113_v15 = vmax.f32 %v110_v14, 0.0 }
  0x9b   :  { %v114_v16 = vpack.c.bf16 %v113_v15, %v113_v15 }
  0x9d   :  { %191 = vmatmul.bf16.vlgmr.msra.gmra.mxu1 %v114_v16 }
  0x9e   :  { %v111_v17 = vpop.f32.mrf.mxu0 }
 0x11a   :  { %v192_v19 = vpop.f32.mrf.mxu1 }
 0x11b   :  { %v193_v20 = vadd.f32 %v297_v18, %v192_v19 }
 0x11d   :  { %v196_v22 = vmax.f32 %v193_v20, 0.0 }
 0x11f   :  { %v201_v23 = vmul.f32 %v298_v21, %v196_v22 }
 0x121   :  { %202 = vadd.xlane.f32.xlu0 %v201_v23 }
 0x122   :  { %v194_v24 = vpop.f32.mrf.mxu1 }
 0x194   :  { %v203_v27 = vpop.xlane.xlu0 %202 }
 0x195   :  { %v208_v28 = vadd.f32 %v299_v26, %v203_v27 }
 0x197   :  { %211 = vperm.xlu0 %295, %v208_v28  }
 0x209   :  { %v212_v31 = vpop.permute.xlu0 %211 }
 0x20a   :  { %v215_v32 = vperm.slane %v212_v31, %v214_v30 }
 0x20c   :  { %218 = vst.msk [vmem:[#allocation9] sm:$0x1] %vm217_vm1, %v215_v32 }
 0x20d   :  { %229 = dma.vmem_to_hbm [thread:$0]  %s225_s4, 16, %s227_s24, [#allocation5]  }
 0x20e   :  { %400 = dma.done.wait [#allocation5], 16  }
 0x20f   :  { %401 = vsyncadd [#allocation5], 4294967280 }
 0x210   :  { %234 = vsyncpa [#allocation4], 1 }
 0x211   :  { %235 = vsyncpa [#allocation7], 1 }
 0x212   :  { %236 = vsyncpa [#allocation5], 1 }

</bundles_post_ra>
